<compile_context>
chip_gen: v5e
topology: v5e:2x2
jax: 0.10.0
libtpu: 0.0.40
codegen_flags: <defaults>
</compile_context>

<pallas_src>
import jax
import jax.numpy as jnp
from jax.experimental import pallas as pl
from jax.experimental.pallas import tpu as pltpu


# ---------------------------------------------------------------------------
# Single fused kernel: hoisted projections + serial latch recurrence
# ---------------------------------------------------------------------------
def _block_kernel(x_ref, w_units_ref, b_in_ref, w_mem_ref, w_val_ref,
                  b_val_ref, set_ref, acts_ref, qs_ref):
    T, B, Dout = qs_ref.shape

    # ---- Phase 1: hoisted, latch-independent work (one big MXU pass) ------
    w_mem = w_mem_ref[...]                                    # (Dout, Dout)
    w_val = w_val_ref[...]                                    # (Dout, Dout)

    # U[t*B + b] = x[b, t] @ W_units + (b_units + b_mem)      (time-major rows)
    u = jnp.dot(x_ref[...], w_units_ref[...],
                preferred_element_type=jnp.float32) + b_in_ref[...]
    # U_val[t*B + b] = U[t*B + b] @ W_val + b_val   (value(.) part that does
    # not depend on the latch state; b_val folded in here).
    u_val = jnp.dot(u, w_val,
                    preferred_element_type=jnp.float32) + b_val_ref[...]
    # W_mv lets value(v) be formed directly from q, breaking the v -> value(v)
    # dependence inside each timestep.
    w_mv = jnp.dot(w_mem, w_val, preferred_element_type=jnp.float32)

    # Hoist broadcasts out of the serial loop (JAX does not CSE them).
    set_b = jnp.broadcast_to(set_ref[...], (B, Dout))         # (B, Dout)

    # ---- Phase 2: serial latch recurrence (q carried in vregs) ------------
    # Latch state starts at zero (Latch.__init__: torch.zeros(size)).
    q = jnp.zeros((B, Dout), jnp.float32)

    # T is small and static: fully unrolled loop, everything VMEM/vreg
    # resident.
    # TODO(synk): for large T, switch to lax.fori_loop (small unroll) or a
    #             time-chunked "arbitrary" grid axis with q in VMEM scratch,
    #             and tile the hoisted projection with a real BlockSpec grid.
    # TODO(synk): on v7x, shard the independent batch recurrences across the
    #             two TensorCores with a leading "parallel" grid axis.
    for ti in range(T):
        u_t = u[ti * B:(ti + 1) * B, :]                       # (B, Dout)
        uval_t = u_val[ti * B:(ti + 1) * B, :]                # (B, Dout)

        if ti == 0:
            # q == 0: both per-step matmuls vanish exactly.
            v = u_t
            v_in = uval_t
        else:
            # Two *independent* small MXU calls (both depend only on q).
            # TODO(synk): fuse into one q @ [W_mem | W_mv] 64-lane push and/or
            #             hold the constant RHS in MXU weight registers via
            #             pltpu.matmul_push_rhs / matmul_acc_lhs for large Dout.
            qm = jnp.dot(q, w_mem, preferred_element_type=jnp.float32)
            qv = jnp.dot(q, w_mv, preferred_element_type=jnp.float32)
            v = u_t + qm                                      # units + memory
            v_in = uval_t + qv                                # value(v)

        # Latch consent gate: hardtanh(0,1)(set * v).mean(-1) >= 0.75.
        consent = jnp.mean(jnp.clip(set_b * v, 0.0, 1.0),
                           axis=-1, keepdims=True)            # (B, 1)
        gate = consent >= 0.75                                 # bool (B, 1)

        # new_q = value(v)*t + q*(1-t) with t in {0,1}  ==  where(gate, ...).
        q = jnp.where(gate, v_in, q)

        acts_ref[ti] = jnp.tanh(v)    # dense (B, Dout) tile at row ti
        qs_ref[ti] = q                # dense (B, Dout) tile at row ti


@jax.jit
def block_forward(x, params):
    """x: (B, T, Din) float32. Returns (acts (B, T, Dout), qs (T, B, Dout))."""
    B, T, Din = x.shape
    Dout = params["w_units"].shape[1]

    # Parameter plumbing outside the kernel (tiny, fused by XLA):
    b_in = params["b_units"] + params["b_mem"]      # folded bias, (1, Dout)

    # Time-major rows so every per-step access inside the kernel is a
    # contiguous block instead of a sublane-strided middle-axis slice.
    x_tb = x.transpose(1, 0, 2).reshape(T * B, Din)

    vmem = pl.BlockSpec(memory_space=pltpu.MemorySpace.VMEM)
    acts_t, qs = pl.pallas_call(
        _block_kernel,
        out_shape=(jax.ShapeDtypeStruct((T, B, Dout), jnp.float32),
                   jax.ShapeDtypeStruct((T, B, Dout), jnp.float32)),
        in_specs=[vmem] * 7,
        out_specs=(vmem, vmem),
        compiler_params=pltpu.CompilerParams(
            vmem_limit_bytes=32 * 1024 * 1024),
    )(x_tb, params["w_units"], b_in, params["w_mem"], params["w_val"],
      params["b_val"], params["set"])

    # qs is already (T, B, Dout) as the module returns; acts needs (B, T, Dout)
    # (wrapper-side layout plumbing, outside the serial loop).
    return acts_t.transpose(1, 0, 2), qs


def block_reference(x, params):
    """Pure-JAX transcription of the PyTorch forward, for verification."""
    B, T, _ = x.shape
    Dout = params["w_units"].shape[1]
    q = jnp.zeros((Dout,), jnp.float32)
    acts, qs = [], []
    for ti in range(T):
        v = (x[:, ti] @ params["w_units"] + params["b_units"][0]
             + q @ params["w_mem"] + params["b_mem"][0])
        s = params["set"][0] * v
        t_gate = (jnp.mean(jnp.clip(s, 0.0, 1.0), axis=-1, keepdims=True)
                  >= 0.75).astype(jnp.float32)
        v_in = v @ params["w_val"] + params["b_val"][0]
        new_q = v_in * t_gate + q * (1.0 - t_gate)
        q = new_q
        acts.append(jnp.tanh(v))
        qs.append(new_q)
    return jnp.stack(acts, axis=1), jnp.stack(qs, axis=0)


def init_params(key, input_dim, output_dim):
    """Deterministic synthetic parameters (PyTorch Linear stored as (in, out))."""
    ks = jax.random.split(key, 7)
    scale_u = 1.0 / jnp.sqrt(input_dim)
    scale_m = 1.0 / jnp.sqrt(output_dim)
    return {
        "w_units": jax.random.uniform(ks[0], (input_dim, output_dim),
                                      jnp.float32, -scale_u, scale_u),
        # Positive bias so v is biased positive and the consent gate actually
        # fires (exercises the latch-update / value path), while keeping the
        # per-row gate mean comfortably away from the 0.75 threshold.
        "b_units": jax.random.uniform(ks[1], (1, output_dim),
                                      jnp.float32, 0.75, 1.25),
        "w_mem": jax.random.uniform(ks[2], (output_dim, output_dim),
                                    jnp.float32, -scale_m, scale_m),
        "b_mem": jax.random.uniform(ks[3], (1, output_dim),
                                    jnp.float32, -scale_m, scale_m),
        # `set` is nn.Parameter(zeros) in __init__; use nonzero values here so
        # the consent-gate path is actually exercised.
        "set": jax.random.uniform(ks[4], (1, output_dim),
                                  jnp.float32, 1.5, 3.5),
        "w_val": jax.random.uniform(ks[5], (output_dim, output_dim),
                                    jnp.float32, -scale_m, scale_m),
        "b_val": jax.random.uniform(ks[6], (1, output_dim),
                                    jnp.float32, -scale_m, scale_m),
    }


if __name__ == "__main__":
    B, T, Din, Dout = 4, 8, 32, 32     # B*Dout = 128 = one full lane row
    key = jax.random.PRNGKey(0)
    kx, kp = jax.random.split(key)
    x = jax.random.normal(kx, (B, T, Din), jnp.float32)
    params = init_params(kp, Din, Dout)

    acts, qs = block_forward(x, params)
    acts = jax.block_until_ready(acts)
    qs = jax.block_until_ready(qs)

    acts_ref, qs_ref = block_reference(x, params)
    assert acts.shape == (B, T, Dout) and qs.shape == (T, B, Dout)
    # The W_mv = W_mem @ W_val refactor reassociates the value-path sums, so
    # allow a slightly looser (still tight, f32-level) tolerance.  The gate
    # path itself (v = u + q @ W_mem) is computed the same way in both paths.
    assert jnp.allclose(acts, acts_ref, atol=1e-4, rtol=1e-4)
    assert jnp.allclose(qs, qs_ref, atol=1e-4, rtol=1e-4)

    print("KERNEL_OK")
</pallas_src>

<mosaic_0001>
module attributes {stable_mosaic.version = 11 : i64} {
  func.func @_block_kernel(%arg0: memref<32x32xf32, #tpu.memory_space<vmem>>, %arg1: memref<32x32xf32, #tpu.memory_space<vmem>>, %arg2: memref<1x32xf32, #tpu.memory_space<vmem>>, %arg3: memref<32x32xf32, #tpu.memory_space<vmem>>, %arg4: memref<32x32xf32, #tpu.memory_space<vmem>>, %arg5: memref<1x32xf32, #tpu.memory_space<vmem>>, %arg6: memref<1x32xf32, #tpu.memory_space<vmem>>, %arg7: memref<8x4x32xf32, #tpu.memory_space<vmem>>, %arg8: memref<8x4x32xf32, #tpu.memory_space<vmem>>) attributes {dimension_semantics = [], scalar_prefetch = 0 : i64, scratch_operands = 0 : i64, tpu.core_type = #tpu.core_type<tc>} {
    %c0 = arith.constant 0 : index
    %c0_0 = arith.constant 0 : index
    %0 = vector.load %arg3[%c0, %c0_0] : memref<32x32xf32, #tpu.memory_space<vmem>>, vector<32x32xf32>
    %c0_1 = arith.constant 0 : index
    %c0_2 = arith.constant 0 : index
    %1 = vector.load %arg4[%c0_1, %c0_2] : memref<32x32xf32, #tpu.memory_space<vmem>>, vector<32x32xf32>
    %c0_3 = arith.constant 0 : index
    %c0_4 = arith.constant 0 : index
    %2 = vector.load %arg0[%c0_3, %c0_4] : memref<32x32xf32, #tpu.memory_space<vmem>>, vector<32x32xf32>
    %c0_5 = arith.constant 0 : index
    %c0_6 = arith.constant 0 : index
    %3 = vector.load %arg1[%c0_5, %c0_6] : memref<32x32xf32, #tpu.memory_space<vmem>>, vector<32x32xf32>
    %cst = arith.constant dense<0.000000e+00> : vector<32x32xf32>
    %4 = tpu.matmul %2, %3, %cst {dimension_numbers = #tpu.dot_dimension_numbers<[1], [0], [0], [1], [0, 0, 1, 1], [], []>} : vector<32x32xf32>, vector<32x32xf32>, vector<32x32xf32> -> vector<32x32xf32>
    %c0_7 = arith.constant 0 : index
    %c0_8 = arith.constant 0 : index
    %5 = vector.load %arg2[%c0_7, %c0_8] : memref<1x32xf32, #tpu.memory_space<vmem>>, vector<1x32xf32>
    %6 = vector.broadcast %5 : vector<1x32xf32> to vector<32x32xf32>
    %7 = arith.addf %4, %6 : vector<32x32xf32>
    %cst_9 = arith.constant dense<0.000000e+00> : vector<32x32xf32>
    %8 = tpu.matmul %7, %1, %cst_9 {dimension_numbers = #tpu.dot_dimension_numbers<[1], [0], [0], [1], [0, 0, 1, 1], [], []>} : vector<32x32xf32>, vector<32x32xf32>, vector<32x32xf32> -> vector<32x32xf32>
    %c0_10 = arith.constant 0 : index
    %c0_11 = arith.constant 0 : index
    %9 = vector.load %arg5[%c0_10, %c0_11] : memref<1x32xf32, #tpu.memory_space<vmem>>, vector<1x32xf32>
    %10 = vector.broadcast %9 : vector<1x32xf32> to vector<32x32xf32>
    %11 = arith.addf %8, %10 : vector<32x32xf32>
    %cst_12 = arith.constant dense<0.000000e+00> : vector<32x32xf32>
    %12 = tpu.matmul %0, %1, %cst_12 {dimension_numbers = #tpu.dot_dimension_numbers<[1], [0], [0], [1], [0, 0, 1, 1], [], []>} : vector<32x32xf32>, vector<32x32xf32>, vector<32x32xf32> -> vector<32x32xf32>
    %c0_13 = arith.constant 0 : index
    %c0_14 = arith.constant 0 : index
    %13 = vector.load %arg6[%c0_13, %c0_14] : memref<1x32xf32, #tpu.memory_space<vmem>>, vector<1x32xf32>
    %14 = vector.shape_cast %13 : vector<1x32xf32> to vector<1x32xf32>
    %15 = vector.broadcast %14 : vector<1x32xf32> to vector<4x32xf32>
    %cst_15 = arith.constant 0.000000e+00 : f32
    %16 = vector.broadcast %cst_15 : f32 to vector<4x32xf32>
    %17 = vector.extract_strided_slice %7 {offsets = [0, 0], sizes = [4, 32], strides = [1, 1]} : vector<32x32xf32> to vector<4x32xf32>
    %18 = vector.extract_strided_slice %11 {offsets = [0, 0], sizes = [4, 32], strides = [1, 1]} : vector<32x32xf32> to vector<4x32xf32>
    %19 = arith.mulf %15, %17 : vector<4x32xf32>
    %cst_16 = arith.constant 0.000000e+00 : f32
    %cst_17 = arith.constant 1.000000e+00 : f32
    %20 = vector.broadcast %cst_16 : f32 to vector<4x32xf32>
    %21 = arith.maximumf %20, %19 : vector<4x32xf32>
    %22 = vector.broadcast %cst_17 : f32 to vector<4x32xf32>
    %23 = arith.minimumf %22, %21 : vector<4x32xf32>
    %cst_18 = arith.constant dense<0.000000e+00> : vector<4xf32>
    %24 = vector.multi_reduction <add>, %23, %cst_18 [1] : vector<4x32xf32> to vector<4xf32>
    %25 = vector.shape_cast %24 : vector<4xf32> to vector<4x1xf32>
    %cst_19 = arith.constant 3.200000e+01 : f32
    %26 = vector.broadcast %cst_19 : f32 to vector<4x1xf32>
    %27 = arith.divf %25, %26 : vector<4x1xf32>
    %cst_20 = arith.constant 7.500000e-01 : f32
    %28 = vector.broadcast %cst_20 : f32 to vector<4x1xf32>
    %29 = arith.cmpf oge, %27, %28 : vector<4x1xf32>
    %30 = vector.shape_cast %29 : vector<4x1xi1> to vector<4x1xi1>
    %31 = vector.broadcast %30 : vector<4x1xi1> to vector<4x32xi1>
    %32 = arith.select %31, %18, %16 : vector<4x32xi1>, vector<4x32xf32>
    %33 = math.tanh %17 : vector<4x32xf32>
    %c0_21 = arith.constant 0 : index
    %c0_22 = arith.constant 0 : index
    %c0_23 = arith.constant 0 : index
    %34 = vector.load %arg7[%c0_21, %c0_22, %c0_23] : memref<8x4x32xf32, #tpu.memory_space<vmem>>, vector<1x4x32xf32>
    %35 = vector.shape_cast %34 : vector<1x4x32xf32> to vector<4x32xf32>
    %36 = vector.shape_cast %33 : vector<4x32xf32> to vector<1x4x32xf32>
    tpu.vector_store %arg7[%c0_21, %c0_22, %c0_23], %36 {strides = array<i32>} : memref<8x4x32xf32, #tpu.memory_space<vmem>>, vector<1x4x32xf32>,
    %c0_24 = arith.constant 0 : index
    %c0_25 = arith.constant 0 : index
    %c0_26 = arith.constant 0 : index
    %37 = vector.load %arg8[%c0_24, %c0_25, %c0_26] : memref<8x4x32xf32, #tpu.memory_space<vmem>>, vector<1x4x32xf32>
    %38 = vector.shape_cast %37 : vector<1x4x32xf32> to vector<4x32xf32>
    %39 = vector.shape_cast %32 : vector<4x32xf32> to vector<1x4x32xf32>
    tpu.vector_store %arg8[%c0_24, %c0_25, %c0_26], %39 {strides = array<i32>} : memref<8x4x32xf32, #tpu.memory_space<vmem>>, vector<1x4x32xf32>,
    %40 = vector.extract_strided_slice %7 {offsets = [4, 0], sizes = [4, 32], strides = [1, 1]} : vector<32x32xf32> to vector<4x32xf32>
    %41 = vector.extract_strided_slice %11 {offsets = [4, 0], sizes = [4, 32], strides = [1, 1]} : vector<32x32xf32> to vector<4x32xf32>
    %cst_27 = arith.constant dense<0.000000e+00> : vector<4x32xf32>
    %42 = tpu.matmul %32, %0, %cst_27 {dimension_numbers = #tpu.dot_dimension_numbers<[1], [0], [0], [1], [0, 0, 1, 1], [], []>} : vector<4x32xf32>, vector<32x32xf32>, vector<4x32xf32> -> vector<4x32xf32>
    %cst_28 = arith.constant dense<0.000000e+00> : vector<4x32xf32>
    %43 = tpu.matmul %32, %12, %cst_28 {dimension_numbers = #tpu.dot_dimension_numbers<[1], [0], [0], [1], [0, 0, 1, 1], [], []>} : vector<4x32xf32>, vector<32x32xf32>, vector<4x32xf32> -> vector<4x32xf32>
    %44 = arith.addf %40, %42 : vector<4x32xf32>
    %45 = arith.addf %41, %43 : vector<4x32xf32>
    %46 = arith.mulf %15, %44 : vector<4x32xf32>
    %cst_29 = arith.constant 0.000000e+00 : f32
    %cst_30 = arith.constant 1.000000e+00 : f32
    %47 = vector.broadcast %cst_29 : f32 to vector<4x32xf32>
    %48 = arith.maximumf %47, %46 : vector<4x32xf32>
    %49 = vector.broadcast %cst_30 : f32 to vector<4x32xf32>
    %50 = arith.minimumf %49, %48 : vector<4x32xf32>
    %cst_31 = arith.constant dense<0.000000e+00> : vector<4xf32>
    %51 = vector.multi_reduction <add>, %50, %cst_31 [1] : vector<4x32xf32> to vector<4xf32>
    %52 = vector.shape_cast %51 : vector<4xf32> to vector<4x1xf32>
    %cst_32 = arith.constant 3.200000e+01 : f32
    %53 = vector.broadcast %cst_32 : f32 to vector<4x1xf32>
    %54 = arith.divf %52, %53 : vector<4x1xf32>
    %cst_33 = arith.constant 7.500000e-01 : f32
    %55 = vector.broadcast %cst_33 : f32 to vector<4x1xf32>
    %56 = arith.cmpf oge, %54, %55 : vector<4x1xf32>
    %57 = vector.shape_cast %56 : vector<4x1xi1> to vector<4x1xi1>
    %58 = vector.broadcast %57 : vector<4x1xi1> to vector<4x32xi1>
    %59 = arith.select %58, %45, %32 : vector<4x32xi1>, vector<4x32xf32>
    %60 = math.tanh %44 : vector<4x32xf32>
    %c1 = arith.constant 1 : index
    %c0_34 = arith.constant 0 : index
    %c0_35 = arith.constant 0 : index
    %61 = vector.load %arg7[%c1, %c0_34, %c0_35] : memref<8x4x32xf32, #tpu.memory_space<vmem>>, vector<1x4x32xf32>
    %62 = vector.shape_cast %61 : vector<1x4x32xf32> to vector<4x32xf32>
    %63 = vector.shape_cast %60 : vector<4x32xf32> to vector<1x4x32xf32>
    tpu.vector_store %arg7[%c1, %c0_34, %c0_35], %63 {strides = array<i32>} : memref<8x4x32xf32, #tpu.memory_space<vmem>>, vector<1x4x32xf32>,
    %c1_36 = arith.constant 1 : index
    %c0_37 = arith.constant 0 : index
    %c0_38 = arith.constant 0 : index
    %64 = vector.load %arg8[%c1_36, %c0_37, %c0_38] : memref<8x4x32xf32, #tpu.memory_space<vmem>>, vector<1x4x32xf32>
    %65 = vector.shape_cast %64 : vector<1x4x32xf32> to vector<4x32xf32>
    %66 = vector.shape_cast %59 : vector<4x32xf32> to vector<1x4x32xf32>
    tpu.vector_store %arg8[%c1_36, %c0_37, %c0_38], %66 {strides = array<i32>} : memref<8x4x32xf32, #tpu.memory_space<vmem>>, vector<1x4x32xf32>,
    %67 = vector.extract_strided_slice %7 {offsets = [8, 0], sizes = [4, 32], strides = [1, 1]} : vector<32x32xf32> to vector<4x32xf32>
    %68 = vector.extract_strided_slice %11 {offsets = [8, 0], sizes = [4, 32], strides = [1, 1]} : vector<32x32xf32> to vector<4x32xf32>
    %cst_39 = arith.constant dense<0.000000e+00> : vector<4x32xf32>
    %69 = tpu.matmul %59, %0, %cst_39 {dimension_numbers = #tpu.dot_dimension_numbers<[1], [0], [0], [1], [0, 0, 1, 1], [], []>} : vector<4x32xf32>, vector<32x32xf32>, vector<4x32xf32> -> vector<4x32xf32>
    %cst_40 = arith.constant dense<0.000000e+00> : vector<4x32xf32>
    %70 = tpu.matmul %59, %12, %cst_40 {dimension_numbers = #tpu.dot_dimension_numbers<[1], [0], [0], [1], [0, 0, 1, 1], [], []>} : vector<4x32xf32>, vector<32x32xf32>, vector<4x32xf32> -> vector<4x32xf32>
    %71 = arith.addf %67, %69 : vector<4x32xf32>
    %72 = arith.addf %68, %70 : vector<4x32xf32>
    %73 = arith.mulf %15, %71 : vector<4x32xf32>
    %cst_41 = arith.constant 0.000000e+00 : f32
    %cst_42 = arith.constant 1.000000e+00 : f32
    %74 = vector.broadcast %cst_41 : f32 to vector<4x32xf32>
    %75 = arith.maximumf %74, %73 : vector<4x32xf32>
    %76 = vector.broadcast %cst_42 : f32 to vector<4x32xf32>
    %77 = arith.minimumf %76, %75 : vector<4x32xf32>
    %cst_43 = arith.constant dense<0.000000e+00> : vector<4xf32>
    %78 = vector.multi_reduction <add>, %77, %cst_43 [1] : vector<4x32xf32> to vector<4xf32>
    %79 = vector.shape_cast %78 : vector<4xf32> to vector<4x1xf32>
    %cst_44 = arith.constant 3.200000e+01 : f32
    %80 = vector.broadcast %cst_44 : f32 to vector<4x1xf32>
    %81 = arith.divf %79, %80 : vector<4x1xf32>
    %cst_45 = arith.constant 7.500000e-01 : f32
    %82 = vector.broadcast %cst_45 : f32 to vector<4x1xf32>
    %83 = arith.cmpf oge, %81, %82 : vector<4x1xf32>
    %84 = vector.shape_cast %83 : vector<4x1xi1> to vector<4x1xi1>
    %85 = vector.broadcast %84 : vector<4x1xi1> to vector<4x32xi1>
    %86 = arith.select %85, %72, %59 : vector<4x32xi1>, vector<4x32xf32>
    %87 = math.tanh %71 : vector<4x32xf32>
    %c2 = arith.constant 2 : index
    %c0_46 = arith.constant 0 : index
    %c0_47 = arith.constant 0 : index
    %88 = vector.load %arg7[%c2, %c0_46, %c0_47] : memref<8x4x32xf32, #tpu.memory_space<vmem>>, vector<1x4x32xf32>
    %89 = vector.shape_cast %88 : vector<1x4x32xf32> to vector<4x32xf32>
    %90 = vector.shape_cast %87 : vector<4x32xf32> to vector<1x4x32xf32>
    tpu.vector_store %arg7[%c2, %c0_46, %c0_47], %90 {strides = array<i32>} : memref<8x4x32xf32, #tpu.memory_space<vmem>>, vector<1x4x32xf32>,
    %c2_48 = arith.constant 2 : index
    %c0_49 = arith.constant 0 : index
    %c0_50 = arith.constant 0 : index
    %91 = vector.load %arg8[%c2_48, %c0_49, %c0_50] : memref<8x4x32xf32, #tpu.memory_space<vmem>>, vector<1x4x32xf32>
    %92 = vector.shape_cast %91 : vector<1x4x32xf32> to vector<4x32xf32>
    %93 = vector.shape_cast %86 : vector<4x32xf32> to vector<1x4x32xf32>
    tpu.vector_store %arg8[%c2_48, %c0_49, %c0_50], %93 {strides = array<i32>} : memref<8x4x32xf32, #tpu.memory_space<vmem>>, vector<1x4x32xf32>,
    %94 = vector.extract_strided_slice %7 {offsets = [12, 0], sizes = [4, 32], strides = [1, 1]} : vector<32x32xf32> to vector<4x32xf32>
    %95 = vector.extract_strided_slice %11 {offsets = [12, 0], sizes = [4, 32], strides = [1, 1]} : vector<32x32xf32> to vector<4x32xf32>
    %cst_51 = arith.constant dense<0.000000e+00> : vector<4x32xf32>
    %96 = tpu.matmul %86, %0, %cst_51 {dimension_numbers = #tpu.dot_dimension_numbers<[1], [0], [0], [1], [0, 0, 1, 1], [], []>} : vector<4x32xf32>, vector<32x32xf32>, vector<4x32xf32> -> vector<4x32xf32>
    %cst_52 = arith.constant dense<0.000000e+00> : vector<4x32xf32>
    %97 = tpu.matmul %86, %12, %cst_52 {dimension_numbers = #tpu.dot_dimension_numbers<[1], [0], [0], [1], [0, 0, 1, 1], [], []>} : vector<4x32xf32>, vector<32x32xf32>, vector<4x32xf32> -> vector<4x32xf32>
    %98 = arith.addf %94, %96 : vector<4x32xf32>
    %99 = arith.addf %95, %97 : vector<4x32xf32>
    %100 = arith.mulf %15, %98 : vector<4x32xf32>
    %cst_53 = arith.constant 0.000000e+00 : f32
    %cst_54 = arith.constant 1.000000e+00 : f32
    %101 = vector.broadcast %cst_53 : f32 to vector<4x32xf32>
    %102 = arith.maximumf %101, %100 : vector<4x32xf32>
    %103 = vector.broadcast %cst_54 : f32 to vector<4x32xf32>
    %104 = arith.minimumf %103, %102 : vector<4x32xf32>
    %cst_55 = arith.constant dense<0.000000e+00> : vector<4xf32>
    %105 = vector.multi_reduction <add>, %104, %cst_55 [1] : vector<4x32xf32> to vector<4xf32>
    %106 = vector.shape_cast %105 : vector<4xf32> to vector<4x1xf32>
    %cst_56 = arith.constant 3.200000e+01 : f32
    %107 = vector.broadcast %cst_56 : f32 to vector<4x1xf32>
    %108 = arith.divf %106, %107 : vector<4x1xf32>
    %cst_57 = arith.constant 7.500000e-01 : f32
    %109 = vector.broadcast %cst_57 : f32 to vector<4x1xf32>
    %110 = arith.cmpf oge, %108, %109 : vector<4x1xf32>
    %111 = vector.shape_cast %110 : vector<4x1xi1> to vector<4x1xi1>
    %112 = vector.broadcast %111 : vector<4x1xi1> to vector<4x32xi1>
    %113 = arith.select %112, %99, %86 : vector<4x32xi1>, vector<4x32xf32>
    %114 = math.tanh %98 : vector<4x32xf32>
    %c3 = arith.constant 3 : index
    %c0_58 = arith.constant 0 : index
    %c0_59 = arith.constant 0 : index
    %115 = vector.load %arg7[%c3, %c0_58, %c0_59] : memref<8x4x32xf32, #tpu.memory_space<vmem>>, vector<1x4x32xf32>
    %116 = vector.shape_cast %115 : vector<1x4x32xf32> to vector<4x32xf32>
    %117 = vector.shape_cast %114 : vector<4x32xf32> to vector<1x4x32xf32>
    tpu.vector_store %arg7[%c3, %c0_58, %c0_59], %117 {strides = array<i32>} : memref<8x4x32xf32, #tpu.memory_space<vmem>>, vector<1x4x32xf32>,
    %c3_60 = arith.constant 3 : index
    %c0_61 = arith.constant 0 : index
    %c0_62 = arith.constant 0 : index
    %118 = vector.load %arg8[%c3_60, %c0_61, %c0_62] : memref<8x4x32xf32, #tpu.memory_space<vmem>>, vector<1x4x32xf32>
    %119 = vector.shape_cast %118 : vector<1x4x32xf32> to vector<4x32xf32>
    %120 = vector.shape_cast %113 : vector<4x32xf32> to vector<1x4x32xf32>
    tpu.vector_store %arg8[%c3_60, %c0_61, %c0_62], %120 {strides = array<i32>} : memref<8x4x32xf32, #tpu.memory_space<vmem>>, vector<1x4x32xf32>,
    %121 = vector.extract_strided_slice %7 {offsets = [16, 0], sizes = [4, 32], strides = [1, 1]} : vector<32x32xf32> to vector<4x32xf32>
    %122 = vector.extract_strided_slice %11 {offsets = [16, 0], sizes = [4, 32], strides = [1, 1]} : vector<32x32xf32> to vector<4x32xf32>
    %cst_63 = arith.constant dense<0.000000e+00> : vector<4x32xf32>
    %123 = tpu.matmul %113, %0, %cst_63 {dimension_numbers = #tpu.dot_dimension_numbers<[1], [0], [0], [1], [0, 0, 1, 1], [], []>} : vector<4x32xf32>, vector<32x32xf32>, vector<4x32xf32> -> vector<4x32xf32>
    %cst_64 = arith.constant dense<0.000000e+00> : vector<4x32xf32>
    %124 = tpu.matmul %113, %12, %cst_64 {dimension_numbers = #tpu.dot_dimension_numbers<[1], [0], [0], [1], [0, 0, 1, 1], [], []>} : vector<4x32xf32>, vector<32x32xf32>, vector<4x32xf32> -> vector<4x32xf32>
    %125 = arith.addf %121, %123 : vector<4x32xf32>
    %126 = arith.addf %122, %124 : vector<4x32xf32>
    %127 = arith.mulf %15, %125 : vector<4x32xf32>
    %cst_65 = arith.constant 0.000000e+00 : f32
    %cst_66 = arith.constant 1.000000e+00 : f32
    %128 = vector.broadcast %cst_65 : f32 to vector<4x32xf32>
    %129 = arith.maximumf %128, %127 : vector<4x32xf32>
    %130 = vector.broadcast %cst_66 : f32 to vector<4x32xf32>
    %131 = arith.minimumf %130, %129 : vector<4x32xf32>
    %cst_67 = arith.constant dense<0.000000e+00> : vector<4xf32>
    %132 = vector.multi_reduction <add>, %131, %cst_67 [1] : vector<4x32xf32> to vector<4xf32>
    %133 = vector.shape_cast %132 : vector<4xf32> to vector<4x1xf32>
    %cst_68 = arith.constant 3.200000e+01 : f32
    %134 = vector.broadcast %cst_68 : f32 to vector<4x1xf32>
    %135 = arith.divf %133, %134 : vector<4x1xf32>
    %cst_69 = arith.constant 7.500000e-01 : f32
    %136 = vector.broadcast %cst_69 : f32 to vector<4x1xf32>
    %137 = arith.cmpf oge, %135, %136 : vector<4x1xf32>
    %138 = vector.shape_cast %137 : vector<4x1xi1> to vector<4x1xi1>
    %139 = vector.broadcast %138 : vector<4x1xi1> to vector<4x32xi1>
    %140 = arith.select %139, %126, %113 : vector<4x32xi1>, vector<4x32xf32>
    %141 = math.tanh %125 : vector<4x32xf32>
    %c4 = arith.constant 4 : index
    %c0_70 = arith.constant 0 : index
    %c0_71 = arith.constant 0 : index
    %142 = vector.load %arg7[%c4, %c0_70, %c0_71] : memref<8x4x32xf32, #tpu.memory_space<vmem>>, vector<1x4x32xf32>
    %143 = vector.shape_cast %142 : vector<1x4x32xf32> to vector<4x32xf32>
    %144 = vector.shape_cast %141 : vector<4x32xf32> to vector<1x4x32xf32>
    tpu.vector_store %arg7[%c4, %c0_70, %c0_71], %144 {strides = array<i32>} : memref<8x4x32xf32, #tpu.memory_space<vmem>>, vector<1x4x32xf32>,
    %c4_72 = arith.constant 4 : index
    %c0_73 = arith.constant 0 : index
    %c0_74 = arith.constant 0 : index
    %145 = vector.load %arg8[%c4_72, %c0_73, %c0_74] : memref<8x4x32xf32, #tpu.memory_space<vmem>>, vector<1x4x32xf32>
    %146 = vector.shape_cast %145 : vector<1x4x32xf32> to vector<4x32xf32>
    %147 = vector.shape_cast %140 : vector<4x32xf32> to vector<1x4x32xf32>
    tpu.vector_store %arg8[%c4_72, %c0_73, %c0_74], %147 {strides = array<i32>} : memref<8x4x32xf32, #tpu.memory_space<vmem>>, vector<1x4x32xf32>,
    %148 = vector.extract_strided_slice %7 {offsets = [20, 0], sizes = [4, 32], strides = [1, 1]} : vector<32x32xf32> to vector<4x32xf32>
    %149 = vector.extract_strided_slice %11 {offsets = [20, 0], sizes = [4, 32], strides = [1, 1]} : vector<32x32xf32> to vector<4x32xf32>
    %cst_75 = arith.constant dense<0.000000e+00> : vector<4x32xf32>
    %150 = tpu.matmul %140, %0, %cst_75 {dimension_numbers = #tpu.dot_dimension_numbers<[1], [0], [0], [1], [0, 0, 1, 1], [], []>} : vector<4x32xf32>, vector<32x32xf32>, vector<4x32xf32> -> vector<4x32xf32>
    %cst_76 = arith.constant dense<0.000000e+00> : vector<4x32xf32>
    %151 = tpu.matmul %140, %12, %cst_76 {dimension_numbers = #tpu.dot_dimension_numbers<[1], [0], [0], [1], [0, 0, 1, 1], [], []>} : vector<4x32xf32>, vector<32x32xf32>, vector<4x32xf32> -> vector<4x32xf32>
    %152 = arith.addf %148, %150 : vector<4x32xf32>
    %153 = arith.addf %149, %151 : vector<4x32xf32>
    %154 = arith.mulf %15, %152 : vector<4x32xf32>
    %cst_77 = arith.constant 0.000000e+00 : f32
    %cst_78 = arith.constant 1.000000e+00 : f32
    %155 = vector.broadcast %cst_77 : f32 to vector<4x32xf32>
    %156 = arith.maximumf %155, %154 : vector<4x32xf32>
    %157 = vector.broadcast %cst_78 : f32 to vector<4x32xf32>
    %158 = arith.minimumf %157, %156 : vector<4x32xf32>
    %cst_79 = arith.constant dense<0.000000e+00> : vector<4xf32>
    %159 = vector.multi_reduction <add>, %158, %cst_79 [1] : vector<4x32xf32> to vector<4xf32>
    %160 = vector.shape_cast %159 : vector<4xf32> to vector<4x1xf32>
    %cst_80 = arith.constant 3.200000e+01 : f32
    %161 = vector.broadcast %cst_80 : f32 to vector<4x1xf32>
    %162 = arith.divf %160, %161 : vector<4x1xf32>
    %cst_81 = arith.constant 7.500000e-01 : f32
    %163 = vector.broadcast %cst_81 : f32 to vector<4x1xf32>
    %164 = arith.cmpf oge, %162, %163 : vector<4x1xf32>
    %165 = vector.shape_cast %164 : vector<4x1xi1> to vector<4x1xi1>
    %166 = vector.broadcast %165 : vector<4x1xi1> to vector<4x32xi1>
    %167 = arith.select %166, %153, %140 : vector<4x32xi1>, vector<4x32xf32>
    %168 = math.tanh %152 : vector<4x32xf32>
    %c5 = arith.constant 5 : index
    %c0_82 = arith.constant 0 : index
    %c0_83 = arith.constant 0 : index
    %169 = vector.load %arg7[%c5, %c0_82, %c0_83] : memref<8x4x32xf32, #tpu.memory_space<vmem>>, vector<1x4x32xf32>
    %170 = vector.shape_cast %169 : vector<1x4x32xf32> to vector<4x32xf32>
    %171 = vector.shape_cast %168 : vector<4x32xf32> to vector<1x4x32xf32>
    tpu.vector_store %arg7[%c5, %c0_82, %c0_83], %171 {strides = array<i32>} : memref<8x4x32xf32, #tpu.memory_space<vmem>>, vector<1x4x32xf32>,
    %c5_84 = arith.constant 5 : index
    %c0_85 = arith.constant 0 : index
    %c0_86 = arith.constant 0 : index
    %172 = vector.load %arg8[%c5_84, %c0_85, %c0_86] : memref<8x4x32xf32, #tpu.memory_space<vmem>>, vector<1x4x32xf32>
    %173 = vector.shape_cast %172 : vector<1x4x32xf32> to vector<4x32xf32>
    %174 = vector.shape_cast %167 : vector<4x32xf32> to vector<1x4x32xf32>
    tpu.vector_store %arg8[%c5_84, %c0_85, %c0_86], %174 {strides = array<i32>} : memref<8x4x32xf32, #tpu.memory_space<vmem>>, vector<1x4x32xf32>,
    %175 = vector.extract_strided_slice %7 {offsets = [24, 0], sizes = [4, 32], strides = [1, 1]} : vector<32x32xf32> to vector<4x32xf32>
    %176 = vector.extract_strided_slice %11 {offsets = [24, 0], sizes = [4, 32], strides = [1, 1]} : vector<32x32xf32> to vector<4x32xf32>
    %cst_87 = arith.constant dense<0.000000e+00> : vector<4x32xf32>
    %177 = tpu.matmul %167, %0, %cst_87 {dimension_numbers = #tpu.dot_dimension_numbers<[1], [0], [0], [1], [0, 0, 1, 1], [], []>} : vector<4x32xf32>, vector<32x32xf32>, vector<4x32xf32> -> vector<4x32xf32>
    %cst_88 = arith.constant dense<0.000000e+00> : vector<4x32xf32>
    %178 = tpu.matmul %167, %12, %cst_88 {dimension_numbers = #tpu.dot_dimension_numbers<[1], [0], [0], [1], [0, 0, 1, 1], [], []>} : vector<4x32xf32>, vector<32x32xf32>, vector<4x32xf32> -> vector<4x32xf32>
    %179 = arith.addf %175, %177 : vector<4x32xf32>
    %180 = arith.addf %176, %178 : vector<4x32xf32>
    %181 = arith.mulf %15, %179 : vector<4x32xf32>
    %cst_89 = arith.constant 0.000000e+00 : f32
    %cst_90 = arith.constant 1.000000e+00 : f32
    %182 = vector.broadcast %cst_89 : f32 to vector<4x32xf32>
    %183 = arith.maximumf %182, %181 : vector<4x32xf32>
    %184 = vector.broadcast %cst_90 : f32 to vector<4x32xf32>
    %185 = arith.minimumf %184, %183 : vector<4x32xf32>
    %cst_91 = arith.constant dense<0.000000e+00> : vector<4xf32>
    %186 = vector.multi_reduction <add>, %185, %cst_91 [1] : vector<4x32xf32> to vector<4xf32>
    %187 = vector.shape_cast %186 : vector<4xf32> to vector<4x1xf32>
    %cst_92 = arith.constant 3.200000e+01 : f32
    %188 = vector.broadcast %cst_92 : f32 to vector<4x1xf32>
    %189 = arith.divf %187, %188 : vector<4x1xf32>
    %cst_93 = arith.constant 7.500000e-01 : f32
    %190 = vector.broadcast %cst_93 : f32 to vector<4x1xf32>
    %191 = arith.cmpf oge, %189, %190 : vector<4x1xf32>
    %192 = vector.shape_cast %191 : vector<4x1xi1> to vector<4x1xi1>
    %193 = vector.broadcast %192 : vector<4x1xi1> to vector<4x32xi1>
    %194 = arith.select %193, %180, %167 : vector<4x32xi1>, vector<4x32xf32>
    %195 = math.tanh %179 : vector<4x32xf32>
    %c6 = arith.constant 6 : index
    %c0_94 = arith.constant 0 : index
    %c0_95 = arith.constant 0 : index
    %196 = vector.load %arg7[%c6, %c0_94, %c0_95] : memref<8x4x32xf32, #tpu.memory_space<vmem>>, vector<1x4x32xf32>
    %197 = vector.shape_cast %196 : vector<1x4x32xf32> to vector<4x32xf32>
    %198 = vector.shape_cast %195 : vector<4x32xf32> to vector<1x4x32xf32>
    tpu.vector_store %arg7[%c6, %c0_94, %c0_95], %198 {strides = array<i32>} : memref<8x4x32xf32, #tpu.memory_space<vmem>>, vector<1x4x32xf32>,
    %c6_96 = arith.constant 6 : index
    %c0_97 = arith.constant 0 : index
    %c0_98 = arith.constant 0 : index
    %199 = vector.load %arg8[%c6_96, %c0_97, %c0_98] : memref<8x4x32xf32, #tpu.memory_space<vmem>>, vector<1x4x32xf32>
    %200 = vector.shape_cast %199 : vector<1x4x32xf32> to vector<4x32xf32>
    %201 = vector.shape_cast %194 : vector<4x32xf32> to vector<1x4x32xf32>
    tpu.vector_store %arg8[%c6_96, %c0_97, %c0_98], %201 {strides = array<i32>} : memref<8x4x32xf32, #tpu.memory_space<vmem>>, vector<1x4x32xf32>,
    %202 = vector.extract_strided_slice %7 {offsets = [28, 0], sizes = [4, 32], strides = [1, 1]} : vector<32x32xf32> to vector<4x32xf32>
    %203 = vector.extract_strided_slice %11 {offsets = [28, 0], sizes = [4, 32], strides = [1, 1]} : vector<32x32xf32> to vector<4x32xf32>
    %cst_99 = arith.constant dense<0.000000e+00> : vector<4x32xf32>
    %204 = tpu.matmul %194, %0, %cst_99 {dimension_numbers = #tpu.dot_dimension_numbers<[1], [0], [0], [1], [0, 0, 1, 1], [], []>} : vector<4x32xf32>, vector<32x32xf32>, vector<4x32xf32> -> vector<4x32xf32>
    %cst_100 = arith.constant dense<0.000000e+00> : vector<4x32xf32>
    %205 = tpu.matmul %194, %12, %cst_100 {dimension_numbers = #tpu.dot_dimension_numbers<[1], [0], [0], [1], [0, 0, 1, 1], [], []>} : vector<4x32xf32>, vector<32x32xf32>, vector<4x32xf32> -> vector<4x32xf32>
    %206 = arith.addf %202, %204 : vector<4x32xf32>
    %207 = arith.addf %203, %205 : vector<4x32xf32>
    %208 = arith.mulf %15, %206 : vector<4x32xf32>
    %cst_101 = arith.constant 0.000000e+00 : f32
    %cst_102 = arith.constant 1.000000e+00 : f32
    %209 = vector.broadcast %cst_101 : f32 to vector<4x32xf32>
    %210 = arith.maximumf %209, %208 : vector<4x32xf32>
    %211 = vector.broadcast %cst_102 : f32 to vector<4x32xf32>
    %212 = arith.minimumf %211, %210 : vector<4x32xf32>
    %cst_103 = arith.constant dense<0.000000e+00> : vector<4xf32>
    %213 = vector.multi_reduction <add>, %212, %cst_103 [1] : vector<4x32xf32> to vector<4xf32>
    %214 = vector.shape_cast %213 : vector<4xf32> to vector<4x1xf32>
    %cst_104 = arith.constant 3.200000e+01 : f32
    %215 = vector.broadcast %cst_104 : f32 to vector<4x1xf32>
    %216 = arith.divf %214, %215 : vector<4x1xf32>
    %cst_105 = arith.constant 7.500000e-01 : f32
    %217 = vector.broadcast %cst_105 : f32 to vector<4x1xf32>
    %218 = arith.cmpf oge, %216, %217 : vector<4x1xf32>
    %219 = vector.shape_cast %218 : vector<4x1xi1> to vector<4x1xi1>
    %220 = vector.broadcast %219 : vector<4x1xi1> to vector<4x32xi1>
    %221 = arith.select %220, %207, %194 : vector<4x32xi1>, vector<4x32xf32>
    %222 = math.tanh %206 : vector<4x32xf32>
    %c7 = arith.constant 7 : index
    %c0_106 = arith.constant 0 : index
    %c0_107 = arith.constant 0 : index
    %223 = vector.load %arg7[%c7, %c0_106, %c0_107] : memref<8x4x32xf32, #tpu.memory_space<vmem>>, vector<1x4x32xf32>
    %224 = vector.shape_cast %223 : vector<1x4x32xf32> to vector<4x32xf32>
    %225 = vector.shape_cast %222 : vector<4x32xf32> to vector<1x4x32xf32>
    tpu.vector_store %arg7[%c7, %c0_106, %c0_107], %225 {strides = array<i32>} : memref<8x4x32xf32, #tpu.memory_space<vmem>>, vector<1x4x32xf32>,
    %c7_108 = arith.constant 7 : index
    %c0_109 = arith.constant 0 : index
    %c0_110 = arith.constant 0 : index
    %226 = vector.load %arg8[%c7_108, %c0_109, %c0_110] : memref<8x4x32xf32, #tpu.memory_space<vmem>>, vector<1x4x32xf32>
    %227 = vector.shape_cast %226 : vector<1x4x32xf32> to vector<4x32xf32>
    %228 = vector.shape_cast %221 : vector<4x32xf32> to vector<1x4x32xf32>
    tpu.vector_store %arg8[%c7_108, %c0_109, %c0_110], %228 {strides = array<i32>} : memref<8x4x32xf32, #tpu.memory_space<vmem>>, vector<1x4x32xf32>,
    return
  }
}

</mosaic_0001>

<bundles_post_ra>
// kernel: block_forward.1
= control target key start
LH: loop header
LB: loop body
LE: loop exit
PB: predicated region body
PF: predicated region fallthrough
CT: control target
= control target key end

     0   :  { %14 = vsyncpa [#allocation3], 0  ;;  %s1124_s0 = inlined_call_operand.vmem [shape: f32[32,32], index: 0, kind: input, shape index: {}]   ;;  %s1125_s1 = inlined_call_operand.vmem [shape: f32[32,32], index: 1, kind: input, shape index: {}]   ;;  %s1126_s2 = inlined_call_operand.vmem [shape: f32[1,32], index: 2, kind: input, shape index: {}]   ;;  %s1127_s3 = inlined_call_operand.vmem [shape: f32[32,32], index: 3, kind: input, shape index: {}]   ;;  %s1128_s4 = inlined_call_operand.hbm [shape: f32[32,32], index: 4, kind: input, shape index: {}]   ;;  %s1129_s5 = inlined_call_operand.vmem [shape: f32[1,32], index: 5, kind: input, shape index: {}]   ;;  %s1130_s6 = inlined_call_operand.vmem [shape: f32[1,32], index: 6, kind: input, shape index: {}]   ;;  %s1131_s7 = inlined_call_operand.vmem [shape: f32[8,4,32], index: 7, kind: output, shape index: {0}]   ;;  %s1132_s8 = inlined_call_operand.hbm [shape: f32[8,4,32], index: 8, kind: output, shape index: {1}]  }
   0x1   :  { %15 = vsyncpa [#allocation4], 0  ;;  %s28_s29 = sshll.u32 %s1128_s4, 4  ;;  %s821_s30 = smov [#allocation2]   ;;  %s29_s29 = int_to_ptr.hbm [resolvable:$true] %s28_s29 }
   0x2   :  { %s30_s9 = sshll.u32 %s821_s30, 4  ;;  %s822_s10 = smov 128   ;;  %s31_s9 = int_to_ptr.vmem [resolvable:$true] %s30_s9 }
   0x3   :  { %s823_s11 = smov 8  }
   0x4   :  { %36 = dma.hbm_to_vmem [thread:$0]  %s29_s29, 512, %s31_s9, [#allocation3], %s822_s10, %s822_s10, %s823_s11  }
   0x5   :  { %817 = dma.done.wait [#allocation3], 512  }
   0x6   :  { %818 = vsyncadd [#allocation3], 4294966784  ;;  %v60_v0 = vld [vmem:[%s1125_s1 + $0x18] sm:$0xff]  ;;  %v59_v1 = vld [vmem:[%s1125_s1 + $0x10] sm:$0xff]  ;;  %vm65_vm0 = vcmask 261120   ;;  %vm200_vm1 = vcmask 257024  }
   0x7   :  { %90 = vmatpush.msra.mxu0 %v60_v0  ;;  %v52_v2 = vld [vmem:[#allocation2 + $0x18] sm:$0xff]  ;;  %v58_v3 = vld [vmem:[%s1125_s1 + $0x8] sm:$0xff]  ;;  %v51_v4 = vld [vmem:[#allocation2 + $0x10] sm:$0xff]  ;;  %v824_v25 = vmov 32.0   ;;  %vm273_vm4 = vcmask 261124   ;;  %s825_s27 = smov [#allocation5]  }
   0x8   :  { %176 = vmatpush.msra.mxu2 %v52_v2  ;;  %135 = vmatpush.msra.mxu1 %v52_v2  ;;  %v50_v5 = vld [vmem:[#allocation2 + $0x8] sm:$0xff]  ;;  %v57_v6 = vld [vmem:[%s1125_s1] sm:$0xff]  ;;  %v909_v11 = vld [vmem:[%s1127_s3 + $0x10] sm:$0xff]  ;;  %s693_s30 = sshll.u32 %s1132_s8, 4  ;;  %s694_s30 = int_to_ptr.hbm [resolvable:$true] %s693_s30 }
   0x9   :  { %91 = vmatpush.msra.mxu0 %v59_v1  ;;  %v53_v7 = vld [vmem:[%s1124_s0] sm:$0xff]  ;;  %v902_v10 = vld [vmem:[%s1127_s3 + $0x8] sm:$0xff]  ;;  %v916_v12 = vld [vmem:[%s1127_s3 + $0x18] sm:$0xff] }
   0xa   :  { %177 = vmatpush.msra.mxu2 %v51_v4  ;;  %136 = vmatpush.msra.mxu1 %v51_v4  ;;  %v49_v8 = vld [vmem:[#allocation2] sm:$0xff]  ;;  %v54_v39 = vld [vmem:[%s1124_s0 + $0x8] sm:$0xff]  ;;  %v55_v50 = vld [vmem:[%s1124_s0 + $0x10] sm:$0xff] }
   0xb   :  { %92 = vmatpush.msra.mxu0 %v58_v3  ;;  %v894_v9 = vld [vmem:[%s1127_s3] sm:$0xff]  ;;  %234 = vmatpush.msra.mxu3 %v916_v12  ;;  %v56_v52 = vld [vmem:[%s1124_s0 + $0x18] sm:$0xff]  ;;  %s691_s3 = sshll.u32 %s825_s27, 4  ;;  %s692_s3 = int_to_ptr.vmem [resolvable:$true] %s691_s3 }
   0xc   :  { %178 = vmatpush.msra.mxu2 %v50_v5  ;;  %137 = vmatpush.msra.mxu1 %v50_v5  ;;  %v943_v13 = vld [vmem:[%s1126_s2] ss:$0 sm:$0xff]  ;;  %s827_s2 = smov 4  }
   0xd   :  { %93 = vmatpush.msra.mxu0 %v57_v6  ;;  %235 = vmatpush.msra.mxu3 %v909_v11  ;;  %v948_v14 = vld [vmem:[%s1130_s6] ss:$0 sm:$0xff] }
   0xe   :  { %708 = vmatmul.msk.f32.vlgmr.msra.gmra.mxu0 %vm65_vm0, %v53_v7  ;;  %179 = vmatpush.msra.mxu2 %v49_v8  ;;  %v983_v34 = vld [vmem:[%s1129_s5] ss:$0 sm:$0xff] }
   0xf   :  { %716 = vmatmul.msk.f32.vlgmr.msra.gmra.mxu2 %vm65_vm0, %v894_v9  ;;  %138 = vmatpush.msra.mxu1 %v49_v8 }
  0x10   :  { %367 = vmatpush.msrb.mxu0 %v916_v12  ;;  %437 = vmatpush.msrb.mxu2 %v916_v12 }
  0x11   :  { %236 = vmatpush.msra.mxu3 %v902_v10 }
  0x12   :  { %368 = vmatpush.msrb.mxu0 %v909_v11  ;;  %438 = vmatpush.msrb.mxu2 %v909_v11 }
  0x13   :  { %237 = vmatpush.msra.mxu3 %v894_v9 }
  0x14   :  { %369 = vmatpush.msrb.mxu0 %v902_v10  ;;  %439 = vmatpush.msrb.mxu2 %v902_v10 }
  0x16   :  { %370 = vmatpush.msrb.mxu0 %v894_v9  ;;  %440 = vmatpush.msrb.mxu2 %v894_v9 }
  0x17   :  { %717 = vmatmul.msk.f32.gmra.mxu2 %vm65_vm0, %v902_v10  ;;  %709 = vmatmul.msk.f32.gmra.mxu0 %vm65_vm0, %v54_v39 }
  0x18   :  { %499 = vmatpush.msra.mxu0 %v916_v12  ;;  %569 = vmatpush.msra.mxu2 %v916_v12 }
  0x1a   :  { %500 = vmatpush.msra.mxu0 %v909_v11  ;;  %570 = vmatpush.msra.mxu2 %v909_v11 }
  0x1c   :  { %501 = vmatpush.msra.mxu0 %v902_v10  ;;  %571 = vmatpush.msra.mxu2 %v902_v10 }
  0x1e   :  { %502 = vmatpush.msra.mxu0 %v894_v9  ;;  %572 = vmatpush.msra.mxu2 %v894_v9 }
  0x1f   :  { %718 = vmatmul.msk.f32.gmra.mxu2 %vm65_vm0, %v909_v11  ;;  %710 = vmatmul.msk.f32.gmra.mxu0 %vm65_vm0, %v55_v50 }
  0x27   :  { %719 = vmatmul.msk.f32.gmra.mxu2 %vm65_vm0, %v916_v12  ;;  %711 = vmatmul.msk.f32.gmra.mxu0 %vm65_vm0, %v56_v52 }
  0x8b   :  { %v95_v15 = vpop.f32.mrf.mxu0 }
  0x8c   :  { %v96_v16 = vadd.f32 %v943_v13, %v95_v15 }
  0x8e   :  { %751 = vtanh.f32 %v96_v16  ;;  %712 = vmatmul.msk.f32.vlgmr.msra.gmra.mxu1 %vm65_vm0, %v96_v16  ;;  %v197_v17 = vmul.f32 %v948_v14, %v96_v16 }
  0x8f   :  { %753 = vrcp.f32 %v824_v25 }
  0x90   :  { %v198_v18 = vmax.f32 %v197_v17, 0.0 }
  0x92   :  { %v199_v19 = vmin.f32 %v198_v18, 1.0  ;;  %v958_v22 = vpop.f32.mrf.mxu2 }
  0x94   :  { %v752_v20 = vpop.eup %751  ;;  %v201_v21 = vsel %vm200_vm1, %v199_v19, 0.0  ;;  %v98_v48 = vpop.f32.mrf.mxu0 }
  0x95   :  { %217 = vst.msk [vmem:[%s1131_s7] sm:$0xf] %vm200_vm1, %v752_v20  ;;  %202 = vadd.xlane.f32.xlu0 %v201_v21  ;;  %v754_v27 = vpop.eup %753  ;;  %v1009_v49 = vadd.f32 %v943_v13, %v98_v48 }
  0x96   :  { %v205_v28 = vmul.f32 32.0, %v754_v27  ;;  %vm209_vm2 = vweird.f32 %v754_v27 }
  0x97   :  { %713 = vmatmul.msk.f32.gmra.mxu1 %vm65_vm0, %v1009_v49 }
  0x98   :  { %v206_v29 = vsub.f32 1.0, %v205_v28 }
  0x9a   :  { %v960_v23 = vpop.f32.mrf.mxu2  ;;  %v207_v30 = vmul.f32 %v754_v27, %v206_v29 }
  0x9c   :  { %v208_v31 = vadd.f32 %v754_v27, %v207_v30  ;;  %v101_v60 = vpop.f32.mrf.mxu0 }
  0x9d   :  { %v1034_v61 = vadd.f32 %v943_v13, %v101_v60 }
  0x9e   :  { %v978_v32 = vsel %vm209_vm2, %v754_v27, %v208_v31 }
  0x9f   :  { %714 = vmatmul.msk.f32.gmra.mxu1 %vm65_vm0, %v1034_v61 }
  0xa2   :  { %v962_v24 = vpop.f32.mrf.mxu2 }
  0xa4   :  { %v104_v62 = vpop.f32.mrf.mxu0 }
  0xa5   :  { %v1039_v63 = vadd.f32 %v943_v13, %v104_v62 }
  0xa7   :  { %715 = vmatmul.msk.f32.gmra.mxu1 %vm65_vm0, %v1039_v63 }
  0xaa   :  { %v964_v26 = vpop.f32.mrf.mxu2 }
  0xab   :  { %254 = vmatpush.msrb.mxu3 %v964_v26  ;;  %387 = vmatpush.msrb.mxu1 %v964_v26 }
  0xad   :  { %255 = vmatpush.msrb.mxu3 %v962_v24  ;;  %388 = vmatpush.msrb.mxu1 %v962_v24 }
  0xaf   :  { %256 = vmatpush.msrb.mxu3 %v960_v23  ;;  %389 = vmatpush.msrb.mxu1 %v960_v23 }
  0xb1   :  { %257 = vmatpush.msrb.mxu3 %v958_v22  ;;  %390 = vmatpush.msrb.mxu1 %v958_v22 }
  0xb3   :  { %519 = vmatpush.msra.mxu1 %v964_v26 }
  0xb5   :  { %520 = vmatpush.msra.mxu1 %v962_v24 }
  0xb7   :  { %521 = vmatpush.msra.mxu1 %v960_v23 }
  0xb9   :  { %522 = vmatpush.msra.mxu1 %v958_v22 }
 0x108   :  { %v203_v33 = vpop.xlane.xlu0 %202 }
 0x109   :  { %v211_v35 = vmul.f32 %v978_v32, %v203_v33 }
 0x10b   :  { %v140_v36 = vpop.f32.mrf.mxu1  ;;  %vm212_vm3 = vcmp.ge.f32.partialorder %v211_v35, 0.75 }
 0x10c   :  { %v141_v37 = vadd.f32 %v983_v34, %v140_v36 }
 0x10e   :  { %v215_v38 = vsel %vm212_vm3, %v141_v37, 0.0 }
 0x10f   :  { %218 = vst.msk [vmem:[#allocation5] sm:$0xf] %vm200_vm1, %v215_v38  ;;  %720 = vmatmul.msk.f32.vlgmr.msra.gmra.mxu3 %vm65_vm0, %v215_v38  ;;  %v281_v56 = vrot.slane %v215_v38, 4 }
 0x110   :  { %305 = vmatpush.msra.mxu3 %v916_v12 }
 0x112   :  { %306 = vmatpush.msra.mxu3 %v909_v11 }
 0x114   :  { %307 = vmatpush.msra.mxu3 %v902_v10  ;;  %v143_v7 = vpop.f32.mrf.mxu1 }
 0x115   :  { %v144_v8 = vadd.f32 %v983_v34, %v143_v7 }
 0x116   :  { %308 = vmatpush.msra.mxu3 %v894_v9 }
 0x117   :  { %721 = vmatmul.msk.f32.vlgmr.msrb.gmra.mxu3 %vm65_vm0, %v215_v38 }
 0x118   :  { %325 = vmatpush.msrb.mxu3 %v964_v26 }
 0x11a   :  { %326 = vmatpush.msrb.mxu3 %v962_v24 }
 0x11c   :  { %327 = vmatpush.msrb.mxu3 %v960_v23 }
 0x11e   :  { %328 = vmatpush.msrb.mxu3 %v958_v22 }
 0x192   :  { %v239_v40 = vpop.f32.mrf.mxu3 }
 0x193   :  { %v263_v41 = vrot.slane %v239_v40, 4 }
 0x195   :  { %v265_v42 = vadd.f32 %v263_v41, %v96_v16 }
 0x197   :  { %755 = vtanh.f32 %v265_v42  ;;  %v270_v43 = vmul.f32 %v948_v14, %v265_v42 }
 0x199   :  { %v271_v44 = vmax.f32 %v270_v43, 0.0 }
 0x19a   :  { %v259_v51 = vpop.f32.mrf.mxu3 }
 0x19b   :  { %v272_v45 = vmin.f32 %v271_v44, 1.0  ;;  %v267_v53 = vrot.slane %v259_v51, 4 }
 0x19d   :  { %v756_v46 = vpop.eup %755  ;;  %v274_v47 = vsel %vm273_vm4, %v272_v45, 0.0  ;;  %v269_v57 = vadd.f32 %v267_v53, %v141_v37 }
 0x19e   :  { %722 = vst.msk [vmem:[%s1131_s7] sm:$0xf0] %vm273_vm4, %v756_v46  ;;  %275 = vadd.xlane.f32.xlu0 %v274_v47 }
 0x211   :  { %v276_v54 = vpop.xlane.xlu0 %275 }
 0x212   :  { %v277_v55 = vmul.f32 %v276_v54, %v978_v32 }
 0x214   :  { %vm278_vm5 = vcmp.ge.f32.partialorder %v277_v55, 0.75 }
 0x215   :  { %v283_v58 = vsel %vm278_vm5, %v269_v57, %v281_v56 }
 0x216   :  { %288 = vst.msk [vmem:[#allocation5] sm:$0xf0] %vm273_vm4, %v283_v58  ;;  %v290_v59 = vrot.slane %v283_v58, 4 }
 0x218   :  { %723 = vmatmul.msk.f32.vlgmr.msra.gmra.mxu3 %vm65_vm0, %v290_v59 }
 0x219   :  { %457 = vmatpush.msra.mxu3 %v964_v26 }
 0x21b   :  { %458 = vmatpush.msra.mxu3 %v962_v24 }
 0x21d   :  { %459 = vmatpush.msra.mxu3 %v960_v23 }
 0x21f   :  { %460 = vmatpush.msra.mxu3 %v958_v22 }
 0x220   :  { %724 = vmatmul.msk.f32.vlgmr.msrb.gmra.mxu3 %vm65_vm0, %v290_v59 }
 0x221   :  { %589 = vmatpush.msrb.mxu3 %v964_v26 }
 0x223   :  { %590 = vmatpush.msrb.mxu3 %v962_v24 }
 0x225   :  { %591 = vmatpush.msrb.mxu3 %v960_v23 }
 0x227   :  { %592 = vmatpush.msrb.mxu3 %v958_v22 }
 0x29b   :  { %v310_v0 = vpop.f32.mrf.mxu3 }
 0x29c   :  { %v333_v1 = vadd.f32 %v310_v0, %v1009_v49 }
 0x29e   :  { %v335_v2 = vmul.f32 %v948_v14, %v333_v1  ;;  %757 = vtanh.f32 %v333_v1 }
 0x2a0   :  { %v336_v3 = vmax.f32 %v335_v2, 0.0 }
 0x2a2   :  { %v337_v4 = vmin.f32 %v336_v3, 1.0 }
 0x2a3   :  { %v330_v13 = vpop.f32.mrf.mxu3 }
 0x2a4   :  { %v758_v5 = vpop.eup %757  ;;  %v338_v6 = vsel %vm200_vm1, %v337_v4, 0.0  ;;  %v334_v17 = vadd.f32 %v330_v13, %v144_v8 }
 0x2a5   :  { %725 = vst.msk [vmem:[%s1131_s7 + $0x8] sm:$0xf] %vm200_vm1, %v758_v5  ;;  %339 = vadd.xlane.f32.xlu1 %v338_v6 }
 0x318   :  { %v340_v15 = vpop.xlane.xlu1 %339 }
 0x319   :  { %v341_v16 = vmul.f32 %v340_v15, %v978_v32 }
 0x31b   :  { %vm342_vm6 = vcmp.ge.f32.partialorder %v341_v16, 0.75 }
 0x31c   :  { %v346_v18 = vsel %vm342_vm6, %v334_v17, %v290_v59 }
 0x31d   :  { %351 = vst.msk [vmem:[#allocation5 + $0x8] sm:$0xf] %vm200_vm1, %v346_v18  ;;  %726 = vmatmul.msk.f32.vlgmr.msrb.gmra.mxu0 %vm65_vm0, %v346_v18  ;;  %727 = vmatmul.msk.f32.vlgmr.msrb.gmra.mxu1 %vm65_vm0, %v346_v18  ;;  %v413_v29 = vrot.slane %v346_v18, 4 }
 0x31e   :  { %651 = vmatpush.msrb.mxu1 %v964_v26  ;;  %631 = vmatpush.msrb.mxu0 %v916_v12 }
 0x320   :  { %652 = vmatpush.msrb.mxu1 %v962_v24  ;;  %632 = vmatpush.msrb.mxu0 %v909_v11 }
 0x322   :  { %653 = vmatpush.msrb.mxu1 %v960_v23  ;;  %633 = vmatpush.msrb.mxu0 %v902_v10  ;;  %v146_v10 = vpop.f32.mrf.mxu1 }
 0x323   :  { %v147_v43 = vadd.f32 %v983_v34, %v146_v10 }
 0x324   :  { %654 = vmatpush.msrb.mxu1 %v958_v22  ;;  %634 = vmatpush.msrb.mxu0 %v894_v9 }
 0x32a   :  { %v1070_v9 = vpop.f32.mrf.mxu1 }
 0x32b   :  { %v150_v13 = vadd.f32 %v983_v34, %v1070_v9 }
 0x39a   :  { %v372_v19 = vpop.f32.mrf.mxu0  ;;  %v392_v22 = vpop.f32.mrf.mxu1 }
 0x39b   :  { %v396_v20 = vrot.slane %v372_v19, 4  ;;  %v400_v23 = vrot.slane %v392_v22, 4 }
 0x39d   :  { %v398_v21 = vadd.f32 %v396_v20, %v1009_v49  ;;  %v402_v30 = vadd.f32 %v400_v23, %v144_v8 }
 0x39f   :  { %759 = vtanh.f32 %v398_v21  ;;  %v403_v25 = vmul.f32 %v948_v14, %v398_v21 }
 0x3a1   :  { %v404_v12 = vmax.f32 %v403_v25, 0.0 }
 0x3a3   :  { %v405_v26 = vmin.f32 %v404_v12, 1.0 }
 0x3a5   :  { %v760_v24 = vpop.eup %759  ;;  %v406_v11 = vsel %vm273_vm4, %v405_v26, 0.0 }
 0x3a6   :  { %728 = vst.msk [vmem:[%s1131_s7 + $0x8] sm:$0xf0] %vm273_vm4, %v760_v24  ;;  %407 = vadd.xlane.f32.xlu1 %v406_v11 }
 0x419   :  { %v408_v27 = vpop.xlane.xlu1 %407 }
 0x41a   :  { %v409_v28 = vmul.f32 %v408_v27, %v978_v32 }
 0x41c   :  { %vm410_vm7 = vcmp.ge.f32.partialorder %v409_v28, 0.75 }
 0x41d   :  { %v415_v31 = vsel %vm410_vm7, %v402_v30, %v413_v29 }
 0x41e   :  { %420 = vst.msk [vmem:[#allocation5 + $0x8] sm:$0xf0] %vm273_vm4, %v415_v31  ;;  %v422_v33 = vrot.slane %v415_v31, 4 }
 0x420   :  { %729 = vmatmul.msk.f32.vlgmr.msrb.gmra.mxu2 %vm65_vm0, %v422_v33  ;;  %730 = vmatmul.msk.f32.vlgmr.msra.gmra.mxu3 %vm65_vm0, %v422_v33 }
 0x4a3   :  { %v442_v35 = vpop.f32.mrf.mxu2  ;;  %v462_v42 = vpop.f32.mrf.mxu3 }
 0x4a4   :  { %v465_v36 = vadd.f32 %v442_v35, %v1034_v61  ;;  %v466_v46 = vadd.f32 %v462_v42, %v147_v43 }
 0x4a6   :  { %v467_v37 = vmul.f32 %v948_v14, %v465_v36  ;;  %761 = vtanh.f32 %v465_v36 }
 0x4a8   :  { %v468_v38 = vmax.f32 %v467_v37, 0.0 }
 0x4aa   :  { %v469_v39 = vmin.f32 %v468_v38, 1.0 }
 0x4ac   :  { %v762_v40 = vpop.eup %761  ;;  %v470_v41 = vsel %vm200_vm1, %v469_v39, 0.0 }
 0x4ad   :  { %731 = vst.msk [vmem:[%s1131_s7 + $0x10] sm:$0xf] %vm200_vm1, %v762_v40  ;;  %471 = vadd.xlane.f32.xlu2 %v470_v41 }
 0x520   :  { %v472_v44 = vpop.xlane.xlu2 %471 }
 0x521   :  { %v473_v45 = vmul.f32 %v472_v44, %v978_v32 }
 0x523   :  { %vm474_vm8 = vcmp.ge.f32.partialorder %v473_v45, 0.75 }
 0x524   :  { %v478_v47 = vsel %vm474_vm8, %v466_v46, %v422_v33 }
 0x525   :  { %483 = vst.msk [vmem:[#allocation5 + $0x10] sm:$0xf] %vm200_vm1, %v478_v47  ;;  %732 = vmatmul.msk.f32.vlgmr.msra.gmra.mxu0 %vm65_vm0, %v478_v47  ;;  %733 = vmatmul.msk.f32.vlgmr.msra.gmra.mxu1 %vm65_vm0, %v478_v47  ;;  %v545_v60 = vrot.slane %v478_v47, 4 }
 0x5a2   :  { %v504_v48 = vpop.f32.mrf.mxu0  ;;  %v524_v56 = vpop.f32.mrf.mxu1 }
 0x5a3   :  { %v528_v49 = vrot.slane %v504_v48, 4  ;;  %v532_v57 = vrot.slane %v524_v56, 4 }
 0x5a5   :  { %v530_v50 = vadd.f32 %v528_v49, %v1034_v61  ;;  %v534_v61 = vadd.f32 %v532_v57, %v147_v43 }
 0x5a7   :  { %763 = vtanh.f32 %v530_v50  ;;  %v535_v51 = vmul.f32 %v948_v14, %v530_v50 }
 0x5a9   :  { %v536_v52 = vmax.f32 %v535_v51, 0.0 }
 0x5ab   :  { %v537_v53 = vmin.f32 %v536_v52, 1.0 }
 0x5ad   :  { %v764_v54 = vpop.eup %763  ;;  %v538_v55 = vsel %vm273_vm4, %v537_v53, 0.0 }
 0x5ae   :  { %734 = vst.msk [vmem:[%s1131_s7 + $0x10] sm:$0xf0] %vm273_vm4, %v764_v54  ;;  %539 = vadd.xlane.f32.xlu2 %v538_v55 }
 0x621   :  { %v540_v58 = vpop.xlane.xlu2 %539 }
 0x622   :  { %v541_v59 = vmul.f32 %v540_v58, %v978_v32 }
 0x624   :  { %vm542_vm9 = vcmp.ge.f32.partialorder %v541_v59, 0.75 }
 0x625   :  { %v547_v62 = vsel %vm542_vm9, %v534_v61, %v545_v60 }
 0x626   :  { %552 = vst.msk [vmem:[#allocation5 + $0x10] sm:$0xf0] %vm273_vm4, %v547_v62  ;;  %v554_v0 = vrot.slane %v547_v62, 4 }
 0x628   :  { %735 = vmatmul.msk.f32.vlgmr.msra.gmra.mxu2 %vm65_vm0, %v554_v0  ;;  %736 = vmatmul.msk.f32.vlgmr.msrb.gmra.mxu3 %vm65_vm0, %v554_v0 }
 0x6ab   :  { %v574_v1 = vpop.f32.mrf.mxu2  ;;  %v594_v8 = vpop.f32.mrf.mxu3 }
 0x6ac   :  { %v597_v2 = vadd.f32 %v574_v1, %v1039_v63  ;;  %v598_v17 = vadd.f32 %v594_v8, %v150_v13 }
 0x6ae   :  { %v599_v3 = vmul.f32 %v948_v14, %v597_v2  ;;  %765 = vtanh.f32 %v597_v2 }
 0x6b0   :  { %v600_v4 = vmax.f32 %v599_v3, 0.0 }
 0x6b2   :  { %v601_v5 = vmin.f32 %v600_v4, 1.0 }
 0x6b4   :  { %v766_v6 = vpop.eup %765  ;;  %v602_v7 = vsel %vm200_vm1, %v601_v5, 0.0 }
 0x6b5   :  { %737 = vst.msk [vmem:[%s1131_s7 + $0x18] sm:$0xf] %vm200_vm1, %v766_v6  ;;  %603 = vadd.xlane.f32.xlu0 %v602_v7 }
 0x728   :  { %v604_v15 = vpop.xlane.xlu0 %603 }
 0x729   :  { %v605_v16 = vmul.f32 %v604_v15, %v978_v32 }
 0x72b   :  { %vm606_vm10 = vcmp.ge.f32.partialorder %v605_v16, 0.75 }
 0x72c   :  { %v610_v18 = vsel %vm606_vm10, %v598_v17, %v554_v0 }
 0x72d   :  { %615 = vst.msk [vmem:[#allocation5 + $0x18] sm:$0xf] %vm200_vm1, %v610_v18  ;;  %738 = vmatmul.msk.f32.vlgmr.msrb.gmra.mxu0 %vm65_vm0, %v610_v18  ;;  %739 = vmatmul.msk.f32.vlgmr.msrb.gmra.mxu1 %vm65_vm0, %v610_v18  ;;  %v677_v9 = vrot.slane %v610_v18, 4 }
 0x7aa   :  { %v636_v19 = vpop.f32.mrf.mxu0  ;;  %v656_v11 = vpop.f32.mrf.mxu1 }
 0x7ab   :  { %v660_v20 = vrot.slane %v636_v19, 4  ;;  %v664_v10 = vrot.slane %v656_v11, 4 }
 0x7ad   :  { %v662_v21 = vadd.f32 %v660_v20, %v1039_v63  ;;  %v666_v22 = vadd.f32 %v664_v10, %v150_v13 }
 0x7af   :  { %767 = vtanh.f32 %v662_v21  ;;  %v667_v25 = vmul.f32 %v948_v14, %v662_v21 }
 0x7b1   :  { %v668_v34 = vmax.f32 %v667_v25, 0.0 }
 0x7b3   :  { %v669_v12 = vmin.f32 %v668_v34, 1.0 }
 0x7b5   :  { %v768_v26 = vpop.eup %767  ;;  %v670_v24 = vsel %vm273_vm4, %v669_v12, 0.0 }
 0x7b6   :  { %740 = vst.msk [vmem:[%s1131_s7 + $0x18] sm:$0xf0] %vm273_vm4, %v768_v26  ;;  %671 = vadd.xlane.f32.xlu1 %v670_v24  ;;  %s826_s7 = smov 64  }
 0x829   :  { %v672_v14 = vpop.xlane.xlu1 %671 }
 0x82a   :  { %v673_v63 = vmul.f32 %v672_v14, %v978_v32 }
 0x82c   :  { %vm674_vm11 = vcmp.ge.f32.partialorder %v673_v63, 0.75 }
 0x82d   :  { %v679_v23 = vsel %vm674_vm11, %v666_v22, %v677_v9 }
 0x82e   :  { %684 = vst.msk [vmem:[#allocation5 + $0x18] sm:$0xf0] %vm273_vm4, %v679_v23 }
 0x82f   :  { %699 = dma.vmem_to_hbm [thread:$0]  %s692_s3, 512, %s694_s30, [#allocation4], %s826_s7, %s826_s7, %s827_s2  }
 0x830   :  { %819 = dma.done.wait [#allocation4], 512  }
 0x831   :  { %820 = vsyncadd [#allocation4], 4294966784 }
 0x832   :  { %706 = vsyncpa [#allocation3], 1 }
 0x833   :  { %707 = vsyncpa [#allocation4], 1 }

</bundles_post_ra>
